<compile_context>
chip_gen: v5e
topology: v5e:2x2
jax: 0.10.0
libtpu: 0.0.40
codegen_flags: <defaults>
</compile_context>

<pallas_src>
import functools

import jax
import jax.numpy as jnp
from jax.experimental import pallas as pl
from jax.experimental.pallas import tpu as pltpu

LANE = 128
IN_PAD = 896    # 784 padded up to 7 * 128
H1 = 128        # fc1 output (already lane-aligned)
H2_PAD = 128    # fc2 output 64 padded to 128 (zero weight cols / zero bias)
OUT_PAD = 128   # fc3 output 10 padded to 128 (zero weight cols / zero bias)
N_IN, N_H1, N_H2, N_OUT = 784, 128, 64, 10


def mlp_kernel(x_ref, w1_ref, b1_ref, w2_ref, b2_ref, w3_ref, b3_ref, o_ref):
    # fc1 + ReLU (bf16 operands on the MXU, f32 accumulate, f32 bias/ReLU)
    h1 = jnp.dot(x_ref[...], w1_ref[...], preferred_element_type=jnp.float32)
    h1 = jnp.maximum(h1 + b1_ref[...], 0.0).astype(jnp.bfloat16)
    # fc2 + ReLU (padded hidden cols stay exactly 0: zero weights + zero bias -> relu(0))
    h2 = jnp.dot(h1, w2_ref[...], preferred_element_type=jnp.float32)
    h2 = jnp.maximum(h2 + b2_ref[...], 0.0).astype(jnp.bfloat16)
    # fc3 (no activation); 128-wide lane-dense store, real logits live in [:, :10]
    o_ref[...] = jnp.dot(h2, w3_ref[...], preferred_element_type=jnp.float32) + b3_ref[...]


def _round_up(n, m):
    return ((n + m - 1) // m) * m


def pack_params(params):
    """Pad to lane-aligned shapes; weights -> bf16 (MXU operands), biases stay f32."""
    w1, b1, w2, b2, w3, b3 = params
    w1p = jnp.zeros((IN_PAD, H1), jnp.float32).at[:N_IN, :].set(w1).astype(jnp.bfloat16)
    b1p = b1.reshape(1, N_H1).astype(jnp.float32)
    w2p = jnp.zeros((H1, H2_PAD), jnp.float32).at[:, :N_H2].set(w2).astype(jnp.bfloat16)
    b2p = jnp.zeros((1, H2_PAD), jnp.float32).at[:, :N_H2].set(b2.reshape(1, N_H2))
    w3p = jnp.zeros((H2_PAD, OUT_PAD), jnp.float32).at[:N_H2, :N_OUT].set(w3).astype(jnp.bfloat16)
    b3p = jnp.zeros((1, OUT_PAD), jnp.float32).at[:, :N_OUT].set(b3.reshape(1, N_OUT))
    return (w1p, b1p, w2p, b2p, w3p, b3p)


@functools.partial(jax.jit, static_argnames=("tm",))
def simple_nn_forward(x, packed_params, *, tm=1024):
    """x: any shape whose trailing dims flatten to 784 (e.g. [B, 1, 28, 28])."""
    w1, b1, w2, b2, w3, b3 = packed_params
    xf = x.reshape(-1, N_IN).astype(jnp.float32)
    B = xf.shape[0]

    # pad features to 896 lanes and cast to bf16 for the MXU
    xf = jnp.pad(xf, ((0, 0), (0, IN_PAD - N_IN))).astype(jnp.bfloat16)

    # batch tile: small batches -> multiple of 16 rows (bf16 sublane pair),
    # large batches -> multiple of 256 (full MXU height), capped at `tm`.
    if B <= 256:
        TM = _round_up(max(B, 1), 16)
    else:
        TM = min(tm, _round_up(B, 256))
    Bp = _round_up(B, TM)
    if Bp != B:
        xf = jnp.pad(xf, ((0, Bp - B), (0, 0)))
    grid = (Bp // TM,)

    flops = 2 * Bp * (IN_PAD * H1 + H1 * H2_PAD + H2_PAD * OUT_PAD)
    bytes_accessed = (
        xf.size * 2 + Bp * OUT_PAD * 4
        + (w1.size + w2.size + w3.size) * 2
        + (b1.size + b2.size + b3.size) * 4
    )

    out = pl.pallas_call(
        mlp_kernel,
        out_shape=jax.ShapeDtypeStruct((Bp, OUT_PAD), jnp.float32),
        grid=grid,
        in_specs=[
            pl.BlockSpec((TM, IN_PAD), lambda i: (i, 0)),       # x  (streamed per tile)
            pl.BlockSpec((IN_PAD, H1), lambda i: (0, 0)),       # w1 (VMEM resident)
            pl.BlockSpec((1, H1), lambda i: (0, 0)),            # b1
            pl.BlockSpec((H1, H2_PAD), lambda i: (0, 0)),       # w2
            pl.BlockSpec((1, H2_PAD), lambda i: (0, 0)),        # b2
            pl.BlockSpec((H2_PAD, OUT_PAD), lambda i: (0, 0)),  # w3
            pl.BlockSpec((1, OUT_PAD), lambda i: (0, 0)),       # b3
        ],
        out_specs=pl.BlockSpec((TM, OUT_PAD), lambda i: (i, 0)),
        compiler_params=pltpu.CompilerParams(
            dimension_semantics=("parallel",),
        ),
        cost_estimate=pl.CostEstimate(
            flops=flops, transcendentals=0, bytes_accessed=bytes_accessed),
    )(xf, w1, b1, w2, b2, w3, b3)

    # drop padded batch rows and padded logit lanes
    return out[:B, :N_OUT]


def init_params(key):
    """Deterministic init matching nn.Linear shapes: fc1(784,128), fc2(128,64), fc3(64,10).
    Stored as [in, out] so x @ W + b == PyTorch x @ W_t.T + b."""
    k1, k2, k3, k4, k5, k6 = jax.random.split(key, 6)
    w1 = jax.random.normal(k1, (N_IN, N_H1), jnp.float32) * 0.02
    b1 = jax.random.normal(k2, (1, N_H1), jnp.float32) * 0.02
    w2 = jax.random.normal(k3, (N_H1, N_H2), jnp.float32) * 0.02
    b2 = jax.random.normal(k4, (1, N_H2), jnp.float32) * 0.02
    w3 = jax.random.normal(k5, (N_H2, N_OUT), jnp.float32) * 0.02
    b3 = jax.random.normal(k6, (1, N_OUT), jnp.float32) * 0.02
    return (w1, b1, w2, b2, w3, b3)


if __name__ == "__main__":
    key = jax.random.PRNGKey(0)
    pkey, xkey = jax.random.split(key)
    params = init_params(pkey)
    packed = pack_params(params)

    # Small MNIST-like batch: [B, 1, 28, 28]; forward flattens to [B, 784].
    x = jax.random.normal(xkey, (8, 1, 28, 28), jnp.float32)

    out = simple_nn_forward(x, packed)
    out = jax.block_until_ready(out)

    # Reference check in plain f32 JAX (kernel uses bf16 MXU operands -> loose tolerance).
    w1, b1, w2, b2, w3, b3 = params
    xf = x.reshape(-1, N_IN)
    ref = jnp.maximum(xf @ w1 + b1, 0.0)
    ref = jnp.maximum(ref @ w2 + b2, 0.0)
    ref = ref @ w3 + b3
    assert out.shape == (8, 10)
    assert jnp.allclose(out, ref, atol=2e-2, rtol=2e-2), float(jnp.max(jnp.abs(out - ref)))

    print("KERNEL_OK")
</pallas_src>

<mosaic_0001>
module attributes {stable_mosaic.version = 11 : i64} {
  func.func @mlp_kernel(%arg0: i32, %arg1: memref<16x896xbf16, #tpu.memory_space<vmem>>, %arg2: memref<896x128xbf16, #tpu.memory_space<vmem>>, %arg3: memref<1x128xf32, #tpu.memory_space<vmem>>, %arg4: memref<128x128xbf16, #tpu.memory_space<vmem>>, %arg5: memref<1x128xf32, #tpu.memory_space<vmem>>, %arg6: memref<128x128xbf16, #tpu.memory_space<vmem>>, %arg7: memref<1x128xf32, #tpu.memory_space<vmem>>, %arg8: memref<16x128xf32, #tpu.memory_space<vmem>>) attributes {dimension_semantics = [#tpu.dimension_semantics<parallel>], iteration_bounds = array<i64: 1>, scalar_prefetch = 0 : i64, scratch_operands = 0 : i64, tpu.core_type = #tpu.core_type<tc>, window_params = [{transform_indices = @transform_0, window_bounds = array<i64: 16, 896>}, {pipeline_mode = #tpu.pipeline_mode<synchronous>, transform_indices = @transform_1, window_bounds = array<i64: 896, 128>}, {pipeline_mode = #tpu.pipeline_mode<synchronous>, transform_indices = @transform_2, window_bounds = array<i64: 1, 128>}, {pipeline_mode = #tpu.pipeline_mode<synchronous>, transform_indices = @transform_3, window_bounds = array<i64: 128, 128>}, {pipeline_mode = #tpu.pipeline_mode<synchronous>, transform_indices = @transform_4, window_bounds = array<i64: 1, 128>}, {pipeline_mode = #tpu.pipeline_mode<synchronous>, transform_indices = @transform_5, window_bounds = array<i64: 128, 128>}, {pipeline_mode = #tpu.pipeline_mode<synchronous>, transform_indices = @transform_6, window_bounds = array<i64: 1, 128>}, {transform_indices = @transform_7, window_bounds = array<i64: 16, 128>}]} {
    %c0 = arith.constant 0 : index
    %c0_0 = arith.constant 0 : index
    %0 = vector.load %arg1[%c0, %c0_0] : memref<16x896xbf16, #tpu.memory_space<vmem>>, vector<16x896xbf16>
    %c0_1 = arith.constant 0 : index
    %c0_2 = arith.constant 0 : index
    %1 = vector.load %arg2[%c0_1, %c0_2] : memref<896x128xbf16, #tpu.memory_space<vmem>>, vector<896x128xbf16>
    %cst = arith.constant dense<0.000000e+00> : vector<16x128xf32>
    %2 = tpu.matmul %0, %1, %cst {dimension_numbers = #tpu.dot_dimension_numbers<[1], [0], [0], [1], [0, 0, 1, 1], [], []>} : vector<16x896xbf16>, vector<896x128xbf16>, vector<16x128xf32> -> vector<16x128xf32>
    %c0_3 = arith.constant 0 : index
    %c0_4 = arith.constant 0 : index
    %3 = vector.load %arg3[%c0_3, %c0_4] : memref<1x128xf32, #tpu.memory_space<vmem>>, vector<1x128xf32>
    %4 = vector.broadcast %3 : vector<1x128xf32> to vector<16x128xf32>
    %5 = arith.addf %2, %4 : vector<16x128xf32>
    %cst_5 = arith.constant 0.000000e+00 : f32
    %6 = vector.broadcast %cst_5 : f32 to vector<16x128xf32>
    %7 = arith.maximumf %5, %6 : vector<16x128xf32>
    %8 = arith.truncf %7 : vector<16x128xf32> to vector<16x128xbf16>
    %c0_6 = arith.constant 0 : index
    %c0_7 = arith.constant 0 : index
    %9 = vector.load %arg4[%c0_6, %c0_7] : memref<128x128xbf16, #tpu.memory_space<vmem>>, vector<128x128xbf16>
    %cst_8 = arith.constant dense<0.000000e+00> : vector<16x128xf32>
    %10 = tpu.matmul %8, %9, %cst_8 {dimension_numbers = #tpu.dot_dimension_numbers<[1], [0], [0], [1], [0, 0, 1, 1], [], []>} : vector<16x128xbf16>, vector<128x128xbf16>, vector<16x128xf32> -> vector<16x128xf32>
    %c0_9 = arith.constant 0 : index
    %c0_10 = arith.constant 0 : index
    %11 = vector.load %arg5[%c0_9, %c0_10] : memref<1x128xf32, #tpu.memory_space<vmem>>, vector<1x128xf32>
    %12 = vector.broadcast %11 : vector<1x128xf32> to vector<16x128xf32>
    %13 = arith.addf %10, %12 : vector<16x128xf32>
    %cst_11 = arith.constant 0.000000e+00 : f32
    %14 = vector.broadcast %cst_11 : f32 to vector<16x128xf32>
    %15 = arith.maximumf %13, %14 : vector<16x128xf32>
    %16 = arith.truncf %15 : vector<16x128xf32> to vector<16x128xbf16>
    %c0_12 = arith.constant 0 : index
    %c0_13 = arith.constant 0 : index
    %17 = vector.load %arg6[%c0_12, %c0_13] : memref<128x128xbf16, #tpu.memory_space<vmem>>, vector<128x128xbf16>
    %cst_14 = arith.constant dense<0.000000e+00> : vector<16x128xf32>
    %18 = tpu.matmul %16, %17, %cst_14 {dimension_numbers = #tpu.dot_dimension_numbers<[1], [0], [0], [1], [0, 0, 1, 1], [], []>} : vector<16x128xbf16>, vector<128x128xbf16>, vector<16x128xf32> -> vector<16x128xf32>
    %c0_15 = arith.constant 0 : index
    %c0_16 = arith.constant 0 : index
    %19 = vector.load %arg7[%c0_15, %c0_16] : memref<1x128xf32, #tpu.memory_space<vmem>>, vector<1x128xf32>
    %20 = vector.broadcast %19 : vector<1x128xf32> to vector<16x128xf32>
    %21 = arith.addf %18, %20 : vector<16x128xf32>
    %c0_17 = arith.constant 0 : index
    %c0_18 = arith.constant 0 : index
    %22 = vector.load %arg8[%c0_17, %c0_18] : memref<16x128xf32, #tpu.memory_space<vmem>>, vector<16x128xf32>
    tpu.vector_store %arg8[%c0_17, %c0_18], %21 {strides = array<i32>} : memref<16x128xf32, #tpu.memory_space<vmem>>, vector<16x128xf32>,
    return
  }
  func.func @transform_0(%arg0: i32) -> (i32, i32) {
    %c0_i32 = arith.constant 0 : i32
    %c0_i32_0 = arith.constant 0 : i32
    return %arg0, %c0_i32 : i32, i32
  }
  func.func @transform_1(%arg0: i32) -> (i32, i32) {
    %c0_i32 = arith.constant 0 : i32
    %c0_i32_0 = arith.constant 0 : i32
    %c0_i32_1 = arith.constant 0 : i32
    return %c0_i32, %c0_i32_0 : i32, i32
  }
  func.func @transform_2(%arg0: i32) -> (i32, i32) {
    %c0_i32 = arith.constant 0 : i32
    %c0_i32_0 = arith.constant 0 : i32
    %c0_i32_1 = arith.constant 0 : i32
    return %c0_i32, %c0_i32_0 : i32, i32
  }
  func.func @transform_3(%arg0: i32) -> (i32, i32) {
    %c0_i32 = arith.constant 0 : i32
    %c0_i32_0 = arith.constant 0 : i32
    %c0_i32_1 = arith.constant 0 : i32
    return %c0_i32, %c0_i32_0 : i32, i32
  }
  func.func @transform_4(%arg0: i32) -> (i32, i32) {
    %c0_i32 = arith.constant 0 : i32
    %c0_i32_0 = arith.constant 0 : i32
    %c0_i32_1 = arith.constant 0 : i32
    return %c0_i32, %c0_i32_0 : i32, i32
  }
  func.func @transform_5(%arg0: i32) -> (i32, i32) {
    %c0_i32 = arith.constant 0 : i32
    %c0_i32_0 = arith.constant 0 : i32
    %c0_i32_1 = arith.constant 0 : i32
    return %c0_i32, %c0_i32_0 : i32, i32
  }
  func.func @transform_6(%arg0: i32) -> (i32, i32) {
    %c0_i32 = arith.constant 0 : i32
    %c0_i32_0 = arith.constant 0 : i32
    %c0_i32_1 = arith.constant 0 : i32
    return %c0_i32, %c0_i32_0 : i32, i32
  }
  func.func @transform_7(%arg0: i32) -> (i32, i32) {
    %c0_i32 = arith.constant 0 : i32
    %c0_i32_0 = arith.constant 0 : i32
    return %arg0, %c0_i32 : i32, i32
  }
}

</mosaic_0001>

<bundles_post_ra>
// kernel: simple_nn_forward.1
= control target key start
LH: loop header
LB: loop body
LE: loop exit
PB: predicated region body
PF: predicated region fallthrough
CT: control target
= control target key end

     0   :  { %s1507_s1 = inlined_call_operand.vmem [shape: bf16[896,128], index: 1, kind: input, shape index: {}]   ;;  %s1508_s2 = inlined_call_operand.vmem [shape: f32[1,128], index: 2, kind: input, shape index: {}]   ;;  %s1509_s0 = inlined_call_operand.vmem [shape: bf16[16,896], index: 0, kind: input, shape index: {}]   ;;  %s1510_s4 = inlined_call_operand.vmem [shape: f32[1,128], index: 4, kind: input, shape index: {}]   ;;  %s1511_s3 = inlined_call_operand.vmem [shape: bf16[128,128], index: 3, kind: input, shape index: {}]   ;;  %s1512_s5 = inlined_call_operand.vmem [shape: bf16[128,128], index: 5, kind: input, shape index: {}]   ;;  %s1513_s6 = inlined_call_operand.vmem [shape: f32[1,128], index: 6, kind: input, shape index: {}]   ;;  %s1514_s7 = inlined_call_operand.vmem [shape: f32[16,128], index: 7, kind: output, shape index: {}]  }
   0x1   :  { %v1126_v0 = vld [vmem:[%s1507_s1 + $0x38] sm:$0xff]  ;;  %v1125_v3 = vld [vmem:[%s1507_s1 + $0x30] sm:$0xff]  ;;  %v1124_v8 = vld [vmem:[%s1507_s1 + $0x28] sm:$0xff] }
   0x2   :  { %v1134_v1 = vld [vmem:[%s1507_s1 + $0x78] sm:$0xff]  ;;  %522 = vmatpush.bf16.msra.mxu0 %v1126_v0  ;;  %v1133_v4 = vld [vmem:[%s1507_s1 + $0x70] sm:$0xff]  ;;  %v1132_v9 = vld [vmem:[%s1507_s1 + $0x68] sm:$0xff] }
   0x3   :  { %v1142_v2 = vld [vmem:[%s1507_s1 + $0xb8] sm:$0xff]  ;;  %536 = vmatpush.bf16.msra.mxu1 %v1134_v1  ;;  %v1141_v6 = vld [vmem:[%s1507_s1 + $0xb0] sm:$0xff]  ;;  %v1140_v10 = vld [vmem:[%s1507_s1 + $0xa8] sm:$0xff] }
   0x4   :  { %v1150_v5 = vld [vmem:[%s1507_s1 + $0xf8] sm:$0xff]  ;;  %550 = vmatpush.bf16.msra.mxu2 %v1142_v2  ;;  %v1149_v7 = vld [vmem:[%s1507_s1 + $0xf0] sm:$0xff]  ;;  %v1148_v11 = vld [vmem:[%s1507_s1 + $0xe8] sm:$0xff] }
   0x5   :  { %564 = vmatpush.bf16.msra.mxu3 %v1150_v5  ;;  %v1123_v12 = vld [vmem:[%s1507_s1 + $0x20] sm:$0xff]  ;;  %v1122_v16 = vld [vmem:[%s1507_s1 + $0x18] sm:$0xff]  ;;  %v1121_v20 = vld [vmem:[%s1507_s1 + $0x10] sm:$0xff] }
   0x6   :  { %523 = vmatpush.bf16.msra.mxu0 %v1125_v3  ;;  %v1131_v13 = vld [vmem:[%s1507_s1 + $0x60] sm:$0xff]  ;;  %v1130_v17 = vld [vmem:[%s1507_s1 + $0x58] sm:$0xff]  ;;  %v1129_v21 = vld [vmem:[%s1507_s1 + $0x50] sm:$0xff] }
   0x7   :  { %537 = vmatpush.bf16.msra.mxu1 %v1133_v4  ;;  %v1139_v14 = vld [vmem:[%s1507_s1 + $0xa0] sm:$0xff]  ;;  %v1138_v18 = vld [vmem:[%s1507_s1 + $0x98] sm:$0xff]  ;;  %v1137_v22 = vld [vmem:[%s1507_s1 + $0x90] sm:$0xff] }
   0x8   :  { %551 = vmatpush.bf16.msra.mxu2 %v1141_v6  ;;  %v1147_v15 = vld [vmem:[%s1507_s1 + $0xe0] sm:$0xff]  ;;  %v1146_v19 = vld [vmem:[%s1507_s1 + $0xd8] sm:$0xff]  ;;  %v1145_v23 = vld [vmem:[%s1507_s1 + $0xd0] sm:$0xff] }
   0x9   :  { %565 = vmatpush.bf16.msra.mxu3 %v1149_v7  ;;  %v1120_v24 = vld [vmem:[%s1507_s1 + $0x8] sm:$0xff]  ;;  %v1119_v27 = vld [vmem:[%s1507_s1] sm:$0xff]  ;;  %v1158_v31 = vld [vmem:[%s1507_s1 + $0x138] sm:$0xff] }
   0xa   :  { %524 = vmatpush.bf16.msra.mxu0 %v1124_v8  ;;  %v1128_v25 = vld [vmem:[%s1507_s1 + $0x48] sm:$0xff]  ;;  %v1127_v29 = vld [vmem:[%s1507_s1 + $0x40] sm:$0xff]  ;;  %v1115_v34 = vld [vmem:[%s1509_s0 + $0x18] sm:$0xf0] }
   0xb   :  { %538 = vmatpush.bf16.msra.mxu1 %v1132_v9  ;;  %v1136_v26 = vld [vmem:[%s1507_s1 + $0x88] sm:$0xff]  ;;  %v1135_v30 = vld [vmem:[%s1507_s1 + $0x80] sm:$0xff]  ;;  %v1166_v38 = vld [vmem:[%s1507_s1 + $0x178] sm:$0xff] }
   0xc   :  { %552 = vmatpush.bf16.msra.mxu2 %v1140_v10  ;;  %v1144_v28 = vld [vmem:[%s1507_s1 + $0xc8] sm:$0xff]  ;;  %v798_v33 = vld [vmem:[%s1509_s0] sm:$0xf]  ;;  %v1116_v35 = vld [vmem:[%s1509_s0 + $0x20] sm:$0xf0] }
   0xd   :  { %566 = vmatpush.bf16.msra.mxu3 %v1148_v11  ;;  %v806_v32 = vld [vmem:[%s1509_s0 + $0x8] sm:$0xf]  ;;  %v1112_v36 = vld [vmem:[%s1509_s0 + $0x4] sm:$0xf]  ;;  %v800_v37 = vld [vmem:[%s1509_s0 + $0x1c] sm:$0xf0]  ;;  %v799_v41 = vor.u32 %v1115_v34, %v798_v33 }
   0xe   :  { %525 = vmatpush.bf16.msra.mxu0 %v1123_v12  ;;  %v1174_v39 = vld [vmem:[%s1507_s1 + $0x1b8] sm:$0xff]  ;;  %v1143_v40 = vld [vmem:[%s1507_s1 + $0xc0] sm:$0xff]  ;;  %v807_v42 = vor.u32 %v1116_v35, %v806_v32  ;;  %v1113_v43 = vld [vmem:[%s1509_s0 + $0xc] sm:$0xf]  ;;  %v803_v45 = vor.u32 %v1112_v36, %v800_v37 }
   0xf   :  { %539 = vmatpush.bf16.msra.mxu1 %v1131_v13  ;;  %v808_v44 = vld [vmem:[%s1509_s0 + $0x24] sm:$0xf0]  ;;  %v1157_v46 = vld [vmem:[%s1507_s1 + $0x130] sm:$0xff]  ;;  %v1155_v53 = vld [vmem:[%s1507_s1 + $0x120] sm:$0xff] }
  0x10   :  { %553 = vmatpush.bf16.msra.mxu2 %v1139_v14  ;;  %v1165_v47 = vld [vmem:[%s1507_s1 + $0x170] sm:$0xff]  ;;  %v811_v49 = vor.u32 %v1113_v43, %v808_v44  ;;  %v1156_v50 = vld [vmem:[%s1507_s1 + $0x128] sm:$0xff]  ;;  %v1163_v54 = vld [vmem:[%s1507_s1 + $0x160] sm:$0xff] }
  0x11   :  { %567 = vmatpush.bf16.msra.mxu3 %v1147_v15  ;;  %v1173_v48 = vld [vmem:[%s1507_s1 + $0x1b0] sm:$0xff]  ;;  %v1164_v51 = vld [vmem:[%s1507_s1 + $0x168] sm:$0xff]  ;;  %v1171_v55 = vld [vmem:[%s1507_s1 + $0x1a0] sm:$0xff] }
  0x12   :  { %526 = vmatpush.bf16.msra.mxu0 %v1122_v16  ;;  %v1172_v52 = vld [vmem:[%s1507_s1 + $0x1a8] sm:$0xff]  ;;  %v1154_v56 = vld [vmem:[%s1507_s1 + $0x118] sm:$0xff]  ;;  %v1153_v59 = vld [vmem:[%s1507_s1 + $0x110] sm:$0xff] }
  0x13   :  { %540 = vmatpush.bf16.msra.mxu1 %v1130_v17  ;;  %v1162_v57 = vld [vmem:[%s1507_s1 + $0x158] sm:$0xff]  ;;  %v1161_v60 = vld [vmem:[%s1507_s1 + $0x150] sm:$0xff]  ;;  %v1152_v62 = vld [vmem:[%s1507_s1 + $0x108] sm:$0xff] }
  0x14   :  { %554 = vmatpush.bf16.msra.mxu2 %v1138_v18  ;;  %v1170_v58 = vld [vmem:[%s1507_s1 + $0x198] sm:$0xff]  ;;  %v1169_v61 = vld [vmem:[%s1507_s1 + $0x190] sm:$0xff]  ;;  %v1160_v63 = vld [vmem:[%s1507_s1 + $0x148] sm:$0xff] }
  0x15   :  { %568 = vmatpush.bf16.msra.mxu3 %v1146_v19  ;;  %v1168_v0 = vld [vmem:[%s1507_s1 + $0x188] sm:$0xff]  ;;  %v1151_v1 = vld [vmem:[%s1507_s1 + $0x100] sm:$0xff]  ;;  %v814_v4 = vld [vmem:[%s1509_s0 + $0x10] sm:$0xf] }
  0x16   :  { %527 = vmatpush.bf16.msra.mxu0 %v1121_v20  ;;  %v1159_v2 = vld [vmem:[%s1507_s1 + $0x140] sm:$0xff]  ;;  %v1117_v5 = vld [vmem:[%s1509_s0 + $0x28] sm:$0xf0]  ;;  %v1114_v6 = vld [vmem:[%s1509_s0 + $0x14] sm:$0xf] }
  0x17   :  { %541 = vmatpush.bf16.msra.mxu1 %v1129_v21  ;;  %v1167_v3 = vld [vmem:[%s1507_s1 + $0x180] sm:$0xff]  ;;  %v816_v7 = vld [vmem:[%s1509_s0 + $0x2c] sm:$0xf0]  ;;  %v822_v8 = vld [vmem:[%s1509_s0 + $0x18] sm:$0xf]  ;;  %v815_v10 = vor.u32 %v1117_v5, %v814_v4 }
  0x18   :  { %555 = vmatpush.bf16.msra.mxu2 %v1137_v22  ;;  %v1118_v9 = vld [vmem:[%s1509_s0 + $0x30] sm:$0xf0]  ;;  %v819_v11 = vor.u32 %v1114_v6, %v816_v7  ;;  %v1182_v13 = vld [vmem:[%s1511_s3 + $0x38] sm:$0xff]  ;;  %v1180_v15 = vld [vmem:[%s1511_s3 + $0x28] sm:$0xff] }
  0x19   :  { %569 = vmatpush.bf16.msra.mxu3 %v1145_v23  ;;  %v823_v12 = vor.u32 %v1118_v9, %v822_v8  ;;  %v1181_v14 = vld [vmem:[%s1511_s3 + $0x30] sm:$0xff]  ;;  %v1179_v16 = vld [vmem:[%s1511_s3 + $0x20] sm:$0xff]  ;;  %v1178_v17 = vld [vmem:[%s1511_s3 + $0x18] sm:$0xff] }
  0x1a   :  { %528 = vmatpush.bf16.msra.mxu0 %v1120_v24  ;;  %v1177_v18 = vld [vmem:[%s1511_s3 + $0x10] sm:$0xff]  ;;  %v1176_v19 = vld [vmem:[%s1511_s3 + $0x8] sm:$0xff]  ;;  %v1175_v22 = vld [vmem:[%s1511_s3] sm:$0xff] }
  0x1b   :  { %542 = vmatpush.bf16.msra.mxu1 %v1128_v25  ;;  %v1191_v24 = vld [vmem:[%s1508_s2] ss:$0 sm:$0xff]  ;;  %v1190_v25 = vld [vmem:[%s1512_s5 + $0x38] sm:$0xff]  ;;  %v1188_v32 = vld [vmem:[%s1512_s5 + $0x28] sm:$0xff] }
  0x1c   :  { %556 = vmatpush.bf16.msra.mxu2 %v1136_v26  ;;  %v1187_v37 = vld [vmem:[%s1512_s5 + $0x20] sm:$0xff] }
  0x1d   :  { %570 = vmatpush.bf16.msra.mxu3 %v1144_v28  ;;  %v1193_v5 = vld [vmem:[%s1513_s6] ss:$0 sm:$0xff] }
  0x1e   :  { %529 = vmatpush.bf16.msra.mxu0 %v1119_v27  ;;  %v1189_v27 = vld [vmem:[%s1512_s5 + $0x30] sm:$0xff] }
  0x1f   :  { %543 = vmatpush.bf16.msra.mxu1 %v1127_v29 }
  0x20   :  { %557 = vmatpush.bf16.msra.mxu2 %v1135_v30 }
  0x21   :  { %571 = vmatpush.bf16.msra.mxu3 %v1143_v40  ;;  %530 = vmatmul.bf16.vlgmr.msra.gmra.mxu0 %v799_v41 }
  0x22   :  { %578 = vmatpush.bf16.msrb.mxu0 %v1158_v31  ;;  %544 = vmatmul.bf16.vlgmr.msra.gmra.mxu1 %v803_v45 }
  0x23   :  { %592 = vmatpush.bf16.msrb.mxu1 %v1166_v38  ;;  %558 = vmatmul.bf16.vlgmr.msra.gmra.mxu2 %v807_v42 }
  0x24   :  { %606 = vmatpush.bf16.msrb.mxu2 %v1174_v39  ;;  %572 = vmatmul.bf16.vlgmr.msra.gmra.mxu3 %v811_v49 }
  0x25   :  { %691 = vmatpush.bf16.msrb.mxu3 %v1182_v13 }
  0x26   :  { %579 = vmatpush.bf16.msrb.mxu0 %v1157_v46 }
  0x27   :  { %593 = vmatpush.bf16.msrb.mxu1 %v1165_v47 }
  0x28   :  { %607 = vmatpush.bf16.msrb.mxu2 %v1173_v48 }
  0x29   :  { %692 = vmatpush.bf16.msrb.mxu3 %v1181_v14 }
  0x2a   :  { %580 = vmatpush.bf16.msrb.mxu0 %v1156_v50 }
  0x2b   :  { %594 = vmatpush.bf16.msrb.mxu1 %v1164_v51 }
  0x2c   :  { %608 = vmatpush.bf16.msrb.mxu2 %v1172_v52 }
  0x2d   :  { %693 = vmatpush.bf16.msrb.mxu3 %v1180_v15 }
  0x2e   :  { %581 = vmatpush.bf16.msrb.mxu0 %v1155_v53 }
  0x2f   :  { %595 = vmatpush.bf16.msrb.mxu1 %v1163_v54 }
  0x30   :  { %609 = vmatpush.bf16.msrb.mxu2 %v1171_v55 }
  0x31   :  { %694 = vmatpush.bf16.msrb.mxu3 %v1179_v16 }
  0x32   :  { %582 = vmatpush.bf16.msrb.mxu0 %v1154_v56 }
  0x33   :  { %596 = vmatpush.bf16.msrb.mxu1 %v1162_v57  ;;  %v1186_v57 = vld [vmem:[%s1512_s5 + $0x18] sm:$0xff] }
  0x34   :  { %610 = vmatpush.bf16.msrb.mxu2 %v1170_v58  ;;  %v1185_v58 = vld [vmem:[%s1512_s5 + $0x10] sm:$0xff] }
  0x35   :  { %695 = vmatpush.bf16.msrb.mxu3 %v1178_v17 }
  0x36   :  { %583 = vmatpush.bf16.msrb.mxu0 %v1153_v59  ;;  %v1184_v59 = vld [vmem:[%s1512_s5 + $0x8] sm:$0xff] }
  0x37   :  { %597 = vmatpush.bf16.msrb.mxu1 %v1161_v60  ;;  %v1183_v60 = vld [vmem:[%s1512_s5] sm:$0xff] }
  0x38   :  { %611 = vmatpush.bf16.msrb.mxu2 %v1169_v61 }
  0x39   :  { %696 = vmatpush.bf16.msrb.mxu3 %v1177_v18 }
  0x3a   :  { %584 = vmatpush.bf16.msrb.mxu0 %v1152_v62  ;;  %v1192_v62 = vld [vmem:[%s1510_s4] ss:$0 sm:$0xff] }
  0x3b   :  { %598 = vmatpush.bf16.msrb.mxu1 %v1160_v63 }
  0x3c   :  { %612 = vmatpush.bf16.msrb.mxu2 %v1168_v0 }
  0x3d   :  { %697 = vmatpush.bf16.msrb.mxu3 %v1176_v19 }
  0x3e   :  { %585 = vmatpush.bf16.msrb.mxu0 %v1151_v1 }
  0x3f   :  { %599 = vmatpush.bf16.msrb.mxu1 %v1159_v2 }
  0x40   :  { %613 = vmatpush.bf16.msrb.mxu2 %v1167_v3 }
  0x41   :  { %586 = vmatmul.bf16.vlgmr.msrb.gmra.mxu0 %v815_v10  ;;  %698 = vmatpush.bf16.msrb.mxu3 %v1175_v22 }
  0x42   :  { %600 = vmatmul.bf16.vlgmr.msrb.gmra.mxu1 %v819_v11  ;;  %776 = vmatpush.bf16.msra.mxu0 %v1190_v25 }
  0x43   :  { %614 = vmatmul.bf16.vlgmr.msrb.gmra.mxu2 %v823_v12 }
  0x46   :  { %777 = vmatpush.bf16.msra.mxu0 %v1189_v27 }
  0x4a   :  { %778 = vmatpush.bf16.msra.mxu0 %v1188_v32 }
  0x4e   :  { %779 = vmatpush.bf16.msra.mxu0 %v1187_v37 }
  0x52   :  { %780 = vmatpush.bf16.msra.mxu0 %v1186_v57 }
  0x56   :  { %781 = vmatpush.bf16.msra.mxu0 %v1185_v58 }
  0x5a   :  { %782 = vmatpush.bf16.msra.mxu0 %v1184_v59 }
  0x5e   :  { %783 = vmatpush.bf16.msra.mxu0 %v1183_v60 }
  0x9e   :  { %v531_v20 = vpop.f32.mrf.mxu0 }
  0x9f   :  { %v545_v21 = vpop.f32.mrf.mxu1  ;;  %v532_v28 = vadd.f32 %v1191_v24, %v531_v20 }
  0xa1   :  { %v546_v33 = vadd.f32 %v545_v21, %v532_v28 }
  0xa6   :  { %v559_v23 = vpop.f32.mrf.mxu2  ;;  %v533_v26 = vpop.f32.mrf.mxu0 }
  0xa7   :  { %v573_v29 = vpop.f32.mrf.mxu3  ;;  %v547_v30 = vpop.f32.mrf.mxu1  ;;  %v534_v31 = vadd.f32 %v1191_v24, %v533_v26  ;;  %v560_v38 = vadd.f32 %v559_v23, %v546_v33 }
  0xa9   :  { %v548_v35 = vadd.f32 %v547_v30, %v534_v31  ;;  %v574_v42 = vadd.f32 %v573_v29, %v560_v38 }
  0xae   :  { %v561_v34 = vpop.f32.mrf.mxu2 }
  0xaf   :  { %v562_v40 = vadd.f32 %v561_v34, %v548_v35  ;;  %v575_v41 = vpop.f32.mrf.mxu3 }
  0xb1   :  { %v576_v44 = vadd.f32 %v575_v41, %v562_v40 }
  0xbe   :  { %v587_v36 = vpop.f32.mrf.mxu0 }
  0xbf   :  { %v601_v39 = vpop.f32.mrf.mxu1  ;;  %v588_v45 = vadd.f32 %v587_v36, %v574_v42 }
  0xc1   :  { %v602_v48 = vadd.f32 %v601_v39, %v588_v45 }
  0xc6   :  { %v615_v43 = vpop.f32.mrf.mxu2  ;;  %v589_v46 = vpop.f32.mrf.mxu0 }
  0xc7   :  { %v590_v47 = vadd.f32 %v589_v46, %v576_v44  ;;  %v603_v49 = vpop.f32.mrf.mxu1  ;;  %v616_v50 = vadd.f32 %v615_v43, %v602_v48 }
  0xc9   :  { %v604_v51 = vadd.f32 %v603_v49, %v590_v47  ;;  %v620_v54 = vmax.f32 %v616_v50, 0.0 }
  0xce   :  { %v617_v52 = vpop.f32.mrf.mxu2 }
  0xcf   :  { %v618_v53 = vadd.f32 %v617_v52, %v604_v51 }
  0xd1   :  { %v621_v55 = vmax.f32 %v618_v53, 0.0 }
  0xd3   :  { %v622_v56 = vpack.c.bf16 %v621_v55, %v620_v54 }
  0xd5   :  { %699 = vmatmul.bf16.vlgmr.msrb.gmra.mxu3 %v622_v56 }
 0x158   :  { %v700_v61 = vpop.f32.mrf.mxu3 }
 0x159   :  { %v701_v63 = vadd.f32 %v1192_v62, %v700_v61 }
 0x15b   :  { %v705_v2 = vmax.f32 %v701_v63, 0.0 }
 0x160   :  { %v702_v0 = vpop.f32.mrf.mxu3 }
 0x161   :  { %v703_v1 = vadd.f32 %v1192_v62, %v702_v0 }
 0x163   :  { %v706_v3 = vmax.f32 %v703_v1, 0.0 }
 0x165   :  { %v707_v4 = vpack.c.bf16 %v706_v3, %v705_v2 }
 0x167   :  { %784 = vmatmul.bf16.vlgmr.msra.gmra.mxu0 %v707_v4 }
 0x1e4   :  { %v785_v6 = vpop.f32.mrf.mxu0 }
 0x1e5   :  { %v786_v7 = vadd.f32 %v1193_v5, %v785_v6 }
 0x1e7   :  { %790 = vst [vmem:[%s1514_s7] sm:$0xff] %v786_v7 }
 0x1ec   :  { %v787_v8 = vpop.f32.mrf.mxu0 }
 0x1ed   :  { %v788_v9 = vadd.f32 %v1193_v5, %v787_v8 }
 0x1ef   :  { %791 = vst [vmem:[%s1514_s7 + $0x8] sm:$0xff] %v788_v9 }

</bundles_post_ra>
